<compile_context>
chip_gen: v6e
topology: v6e:2x2x1
jax: 0.10.0
libtpu: 0.0.40
codegen_flags: <defaults>
</compile_context>

<pallas_src>
import math
import jax
import jax.numpy as jnp
from jax.experimental import pallas as pl
from jax.experimental.pallas import tpu as pltpu


def _round_up(v, m):
    return ((v + m - 1) // m) * m


def _sublane_min_for(dtype):
    # Minimum sublane tile so vregs are fully packed (8 rows per f32 vreg,
    # 16 for bf16, 32 for 8-bit types).
    return {4: 8, 2: 16, 1: 32}.get(jnp.dtype(dtype).itemsize, 8)


# ---------------------------------------------------------------------------
# Kernels
# ---------------------------------------------------------------------------

def _linear_kernel_acc_in_out(x_ref, wt_ref, b_ref, o_ref):
    """f32-output path: accumulate directly into the resident output block."""
    # x_ref: [tm, tk], wt_ref: [tk, tn], b_ref: [1, tn], o_ref: [tm, tn] (f32)
    k = pl.program_id(2)

    @pl.when(k == 0)
    def _():
        o_ref[...] = jnp.broadcast_to(b_ref[...].astype(o_ref.dtype), o_ref.shape)

    o_ref[...] += jnp.dot(x_ref[...], wt_ref[...],
                          preferred_element_type=jnp.float32)


def _linear_kernel_scratch(x_ref, wt_ref, b_ref, o_ref, acc_ref):
    """Narrow-output path: f32 VMEM accumulator, bias+cast epilogue at k==last."""
    k = pl.program_id(2)

    @pl.when(k == 0)
    def _():
        acc_ref[...] = jnp.zeros_like(acc_ref)

    acc_ref[...] += jnp.dot(x_ref[...], wt_ref[...],
                            preferred_element_type=jnp.float32)

    @pl.when(k == pl.num_programs(2) - 1)
    def _():
        o_ref[...] = (acc_ref[...] + b_ref[...].astype(jnp.float32)).astype(o_ref.dtype)


# ---------------------------------------------------------------------------
# Wrapper (expects pre-padded, pre-cast weight_t / bias; only pads x per call)
# ---------------------------------------------------------------------------

def prune_linear_forward(x, weight_t_padded, bias2d_padded, *, n_out,
                         tm=512, tn=512, tk=1024,
                         compute_dtype=jnp.bfloat16, out_dtype=None,
                         weight_buffers=None):
    """x: [B, K]; weight_t_padded: [Kp, Np] (K/N padded to tk/tn multiples,
    already in compute dtype); bias2d_padded: [1, Np] f32; n_out: logical N."""
    B, K = x.shape
    Kp, Np = weight_t_padded.shape
    assert Kp % tk == 0 and Np % tn == 0 and Kp >= K and Np >= n_out

    if out_dtype is None:
        out_dtype = x.dtype
    if compute_dtype is not None and x.dtype != compute_dtype:
        x = x.astype(compute_dtype)

    # Adapt the M tile for small batches; keep it a multiple of the packed
    # sublane minimum so epilogue stores stay unmasked / fully packed.
    tm = min(tm, _round_up(B, _sublane_min_for(x.dtype)))
    Mp = _round_up(B, tm)
    if (Mp, Kp) != (B, K):
        x = jnp.pad(x, ((0, Mp - B), (0, Kp - K)))

    grid = (Mp // tm, Np // tn, Kp // tk)
    n_m_blocks, n_n_blocks = grid[0], grid[1]

    # Truthful HBM-traffic estimate: x is re-streamed once per N block,
    # W^T (and bias) once per M block.
    cost = pl.CostEstimate(
        flops=2 * Mp * Kp * Np,
        transcendentals=0,
        bytes_accessed=(x.size * x.dtype.itemsize * n_n_blocks
                        + weight_t_padded.size * weight_t_padded.dtype.itemsize * n_m_blocks
                        + bias2d_padded.size * bias2d_padded.dtype.itemsize * n_m_blocks
                        + Mp * Np * jnp.dtype(out_dtype).itemsize),
    )

    # Optional deeper buffering on the weight stream (useful when Mp/tm == 1
    # and the per-k weight DMA is exposed between MXU bursts).
    w_spec_kwargs = {}
    if weight_buffers is not None and weight_buffers != 2:
        w_spec_kwargs["pipeline_mode"] = pl.Buffered(weight_buffers)

    in_specs = [
        pl.BlockSpec((tm, tk), lambda i, j, k: (i, k)),                   # x tile
        pl.BlockSpec((tk, tn), lambda i, j, k: (k, j), **w_spec_kwargs),  # W^T tile
        pl.BlockSpec((1, tn), lambda i, j, k: (0, j)),                    # bias tile
    ]
    out_spec = pl.BlockSpec((tm, tn), lambda i, j, k: (i, j))

    if jnp.dtype(out_dtype) == jnp.dtype(jnp.float32):
        kernel = _linear_kernel_acc_in_out
        scratch = []
    else:
        kernel = _linear_kernel_scratch
        scratch = [pltpu.VMEM((tm, tn), jnp.float32)]

    out = pl.pallas_call(
        kernel,
        out_shape=jax.ShapeDtypeStruct((Mp, Np), out_dtype),
        grid_spec=pltpu.PrefetchScalarGridSpec(
            num_scalar_prefetch=0,
            grid=grid,
            in_specs=in_specs,
            out_specs=out_spec,
            scratch_shapes=scratch,
        ),
        compiler_params=pltpu.CompilerParams(
            dimension_semantics=("parallel", "parallel", "arbitrary")),
        cost_estimate=cost,
    )(x, weight_t_padded, bias2d_padded)

    if (Mp, Np) != (B, n_out):
        out = out[:B, :n_out]
    return out


# ---------------------------------------------------------------------------
# Module equivalent
# ---------------------------------------------------------------------------

class PruneLinearJax:
    """JAX/Pallas equivalent of the PyTorch PruneLinear module."""

    def __init__(self, in_features, out_features, key, *,
                 compute_dtype=jnp.bfloat16, out_dtype=jnp.float32,
                 tm=512, tn=512, tk=1024, weight_buffers=None):
        self.in_features = in_features
        self.out_features = out_features
        self.compute_dtype = compute_dtype
        self.out_dtype = out_dtype
        self._tm, self._tn, self._tk = tm, tn, tk
        self._weight_buffers = weight_buffers

        kw, kb = jax.random.split(key)
        m, n = in_features, out_features
        # matches: self.linear.weight.data.normal_(0, sqrt(2/(m+n)))
        self.weight = (jax.random.normal(kw, (out_features, in_features), jnp.float32)
                       * math.sqrt(2.0 / (m + n)))
        # nn.Linear default bias init: U(-1/sqrt(in), 1/sqrt(in))
        bound = 1.0 / math.sqrt(in_features)
        self.bias = jax.random.uniform(kb, (out_features,), jnp.float32,
                                       minval=-bound, maxval=bound)
        self.mask = jnp.ones((out_features, in_features), jnp.float32)
        self.sparsity = 1.0
        self._refresh_kernel_weights()   # pad + cast ONCE, not per forward

    def _refresh_kernel_weights(self):
        """Pre-transpose, pre-cast and pre-pad the weight/bias for the kernel."""
        K, N = self.in_features, self.out_features
        tn = min(self._tn, _round_up(N, 128))
        tk = min(self._tk, _round_up(K, 128))
        Kp, Np = _round_up(K, tk), _round_up(N, tn)

        wt = self.weight.T.astype(self.compute_dtype)          # [K, N]
        if (Kp, Np) != (K, N):
            wt = jnp.pad(wt, ((0, Kp - K), (0, Np - N)))
        b2 = self.bias.reshape(1, N)                            # bias stays f32
        if Np != N:
            b2 = jnp.pad(b2, ((0, 0), (0, Np - N)))

        self._wt_pad = wt
        self._b_pad = b2
        self._tn_eff, self._tk_eff = tn, tk

    def __call__(self, x):
        return prune_linear_forward(
            x, self._wt_pad, self._b_pad,
            n_out=self.out_features,
            tm=self._tm, tn=self._tn_eff, tk=self._tk_eff,
            compute_dtype=self.compute_dtype, out_dtype=self.out_dtype,
            weight_buffers=self._weight_buffers)

    # ---- pruning: mask is baked into the weight, as in the PyTorch module ----
    def _apply_mask(self, mask):
        self.mask = mask.astype(self.weight.dtype)
        self.weight = self.weight * self.mask
        self._refresh_kernel_weights()          # re-derive padded W^T once per prune
        total = self.mask.size
        nonzero = float(self.mask.sum())
        self.sparsity = 1.0 - nonzero / total

    def prune_by_percentage(self, q=5.0):
        threshold = jnp.percentile(jnp.abs(self.weight), q)
        self._apply_mask(jnp.abs(self.weight) >= threshold)

    def prune_by_std(self, s=0.25):
        threshold = s * jnp.std(self.weight)
        self._apply_mask(jnp.abs(self.weight) >= threshold)


if __name__ == "__main__":
    key = jax.random.PRNGKey(0)
    k_x, k_mod = jax.random.split(key)

    batch, in_features, out_features = 8, 32, 64
    x = jax.random.normal(k_x, (batch, in_features), jnp.float32)

    # Default path: bf16 MXU inputs, f32 accumulation, f32 output.
    layer = PruneLinearJax(in_features, out_features, k_mod)
    out = jax.block_until_ready(layer(x))
    ref = x @ layer.weight.T + layer.bias
    assert out.shape == (batch, out_features)
    assert jnp.allclose(out, ref, atol=3e-2, rtol=3e-2), "bf16 path mismatch"

    # Exact-ish f32 compute path (tighter tolerance).
    layer_f32 = PruneLinearJax(in_features, out_features, k_mod,
                               compute_dtype=jnp.float32)
    out32 = jax.block_until_ready(layer_f32(x))
    ref32 = x @ layer_f32.weight.T + layer_f32.bias
    assert jnp.allclose(out32, ref32, atol=1e-4, rtol=1e-4), "f32 path mismatch"

    # Pruned forward (mask baked into weight, matching PyTorch semantics).
    layer.prune_by_percentage(q=50.0)
    out_p = jax.block_until_ready(layer(x))
    ref_p = x @ layer.weight.T + layer.bias
    assert jnp.allclose(out_p, ref_p, atol=3e-2, rtol=3e-2), "pruned path mismatch"

    print("KERNEL_OK")
</pallas_src>

<mosaic_0001>
module attributes {stable_mosaic.version = 11 : i64} {
  func.func @_linear_kernel_acc_in_out(%arg0: i32, %arg1: i32, %arg2: i32, %arg3: memref<16x128xbf16, #tpu.memory_space<vmem>>, %arg4: memref<128x128xbf16, #tpu.memory_space<vmem>>, %arg5: memref<1x128xf32, #tpu.memory_space<vmem>>, %arg6: memref<16x128xf32, #tpu.memory_space<vmem>>) attributes {dimension_semantics = [#tpu.dimension_semantics<parallel>, #tpu.dimension_semantics<parallel>, #tpu.dimension_semantics<arbitrary>], iteration_bounds = array<i64: 1, 1, 1>, scalar_prefetch = 0 : i64, scratch_operands = 0 : i64, tpu.core_type = #tpu.core_type<tc>, window_params = [{transform_indices = @transform_0, window_bounds = array<i64: 16, 128>}, {transform_indices = @transform_1, window_bounds = array<i64: 128, 128>}, {transform_indices = @transform_2, window_bounds = array<i64: 1, 128>}, {transform_indices = @transform_3, window_bounds = array<i64: 16, 128>}]} {
    %c0_i32 = arith.constant 0 : i32
    %0 = arith.cmpi eq, %arg2, %c0_i32 : i32
    %1 = arith.extui %0 : i1 to i32
    %c0_i32_0 = arith.constant 0 : i32
    %2 = arith.cmpi ne, %1, %c0_i32_0 : i32
    scf.if %2 {
      %c0_8 = arith.constant 0 : index
      %c0_9 = arith.constant 0 : index
      %9 = vector.load %arg5[%c0_8, %c0_9] : memref<1x128xf32, #tpu.memory_space<vmem>>, vector<1x128xf32>
      %10 = vector.shape_cast %9 : vector<1x128xf32> to vector<1x128xf32>
      %11 = vector.broadcast %10 : vector<1x128xf32> to vector<16x128xf32>
      %c0_10 = arith.constant 0 : index
      %c0_11 = arith.constant 0 : index
      %12 = vector.load %arg6[%c0_10, %c0_11] : memref<16x128xf32, #tpu.memory_space<vmem>>, vector<16x128xf32>
      tpu.vector_store %arg6[%c0_10, %c0_11], %11 {strides = array<i32>} : memref<16x128xf32, #tpu.memory_space<vmem>>, vector<16x128xf32>,
    } else {
    }
    %c0 = arith.constant 0 : index
    %c0_1 = arith.constant 0 : index
    %3 = vector.load %arg6[%c0, %c0_1] : memref<16x128xf32, #tpu.memory_space<vmem>>, vector<16x128xf32>
    %c0_2 = arith.constant 0 : index
    %c0_3 = arith.constant 0 : index
    %4 = vector.load %arg3[%c0_2, %c0_3] : memref<16x128xbf16, #tpu.memory_space<vmem>>, vector<16x128xbf16>
    %c0_4 = arith.constant 0 : index
    %c0_5 = arith.constant 0 : index
    %5 = vector.load %arg4[%c0_4, %c0_5] : memref<128x128xbf16, #tpu.memory_space<vmem>>, vector<128x128xbf16>
    %cst = arith.constant dense<0.000000e+00> : vector<16x128xf32>
    %6 = tpu.matmul %4, %5, %cst {dimension_numbers = #tpu.dot_dimension_numbers<[1], [0], [0], [1], [0, 0, 1, 1], [], []>} : vector<16x128xbf16>, vector<128x128xbf16>, vector<16x128xf32> -> vector<16x128xf32>
    %7 = arith.addf %3, %6 : vector<16x128xf32>
    %c0_6 = arith.constant 0 : index
    %c0_7 = arith.constant 0 : index
    %8 = vector.load %arg6[%c0_6, %c0_7] : memref<16x128xf32, #tpu.memory_space<vmem>>, vector<16x128xf32>
    tpu.vector_store %arg6[%c0_6, %c0_7], %7 {strides = array<i32>} : memref<16x128xf32, #tpu.memory_space<vmem>>, vector<16x128xf32>,
    return
  }
  func.func @transform_0(%arg0: i32, %arg1: i32, %arg2: i32) -> (i32, i32) {
    %c0_i32 = arith.constant 0 : i32
    return %arg0, %arg2 : i32, i32
  }
  func.func @transform_1(%arg0: i32, %arg1: i32, %arg2: i32) -> (i32, i32) {
    %c0_i32 = arith.constant 0 : i32
    return %arg2, %arg1 : i32, i32
  }
  func.func @transform_2(%arg0: i32, %arg1: i32, %arg2: i32) -> (i32, i32) {
    %c0_i32 = arith.constant 0 : i32
    %c0_i32_0 = arith.constant 0 : i32
    return %c0_i32, %arg1 : i32, i32
  }
  func.func @transform_3(%arg0: i32, %arg1: i32, %arg2: i32) -> (i32, i32) {
    %c0_i32 = arith.constant 0 : i32
    return %arg0, %arg1 : i32, i32
  }
}

</mosaic_0001>

<bundles_post_ra>
// kernel: tpu_custom_call.1
= control target key start
LH: loop header
LB: loop body
LE: loop exit
PB: predicated region body
PF: predicated region fallthrough
CT: control target
= control target key end

     0   :  { %8 = vsyncpa [#allocation3], 0  ;;  %s358_s0 = inlined_call_operand.hbm [shape: bf16[16,128], index: 0, kind: input, shape index: {}]   ;;  %s359_s1 = inlined_call_operand.hbm [shape: bf16[128,128], index: 1, kind: input, shape index: {}]   ;;  %s360_s2 = inlined_call_operand.vmem [shape: f32[1,128], index: 2, kind: input, shape index: {}]   ;;  %s361_s3 = inlined_call_operand.hbm [shape: f32[16,128], index: 3, kind: output, shape index: {}]  }
   0x1   :  { %9 = vsyncpa [#allocation6], 0 }
   0x2   :  { %10 = vsyncpa [#allocation4], 0  ;;  %s317_s12 = smov [#allocation2]  }
   0x3   :  { %s16_s13 = sshll.u32 %s317_s12, 4  ;;  %s17_s13 = int_to_ptr.vmem [resolvable:$true] %s16_s13 }
   0x4   :  { %s259_s14 = scalar_lea.vmem %s17_s13, 128  ;;  %p264_p1 = scmp.lt.s32.totalorder %s17_s13, %s17_s13 }
   0x5   :  { %p260_p0 = scmp.ne.s32.totalorder %s17_s13, %s259_s14  ;;  %p265_p2 = scmp.lt.s32.totalorder %s259_s14, %s259_s14 }
   0x7   :  { %p266_p3 = por %p265_p2, %p264_p1 }
   0x9   :  { %p267_p4 = pnand %p266_p3, %p260_p0 }
   0xb   :  { %270 = shalt.err (!%p267_p4)
}
   0xc   :  { %s318_s15 = smov 64   ;;  %s319_s16 = smov 4  }
   0xd   :  { %22 = dma.hbm_to_vmem [thread:$0]  %s358_s0, 128, %s17_s13, [#allocation3], %s318_s15, %s318_s15, %s319_s16  }
   0xe   :  { %s320_s19 = smov [#allocation5]  }
   0xf   :  { %s28_s20 = sshll.u32 %s320_s19, 4  ;;  %s29_s20 = int_to_ptr.vmem [resolvable:$true] %s28_s20 }
  0x10   :  { %s279_s21 = scalar_lea.vmem %s29_s20, 1024  ;;  %p284_p6 = scmp.lt.s32.totalorder %s29_s20, %s29_s20 }
  0x11   :  { %p280_p5 = scmp.ne.s32.totalorder %s29_s20, %s279_s21  ;;  %p285_p7 = scmp.lt.s32.totalorder %s279_s21, %s279_s21 }
  0x13   :  { %p286_p8 = por %p285_p7, %p284_p6 }
  0x15   :  { %p287_p9 = pnand %p286_p8, %p280_p5 }
  0x17   :  { %290 = shalt.err (!%p287_p9)
}
  0x18   :  { %34 = dma.hbm_to_vmem [thread:$0]  %s359_s1, 1024, %s29_s20, [#allocation6], %s318_s15, %s318_s15, %s319_s16  }
  0x19   :  { %311 = dma.done.wait [#allocation3], 128  }
  0x1a   :  { %312 = vsyncadd [#allocation3], 4294967168 }
  0x1b   :  { %313 = dma.done.wait [#allocation6], 1024  }
  0x1c   :  { %314 = vsyncadd [#allocation6], 4294966272  ;;  %v321_v0 = vmov 0.0   ;;  %vm322_vm0 = vmmov 0   ;;  %v242_v1 = vld [vmem:[#allocation5 + $0x38] sm:$0xff]   ;;  %v243_v2 = vld [vmem:[#allocation5 + $0x30] sm:$0xff]  }
  0x1d   :  { %213 = vmatprep.subr.bf16.mxu0 %v321_v0  ;;  %229 = vmatprep.mubr.msk.bf16.mxu0 %vm322_vm0, %v321_v0  ;;  %v244_v3 = vld [vmem:[#allocation5 + $0x28] sm:$0xff]   ;;  %v245_v4 = vld [vmem:[#allocation5 + $0x20] sm:$0xff]   ;;  %v246_v5 = vld [vmem:[#allocation5 + $0x18] sm:$0xff]   ;;  %s323_s24 = smov [#allocation7]  }
  0x1e   :  { %214 = vmatpush3.bf16.msra.mxu0 %v242_v1  ;;  %v247_v6 = vld [vmem:[#allocation5 + $0x10] sm:$0xff]   ;;  %v248_v7 = vld [vmem:[#allocation5 + $0x8] sm:$0xff]   ;;  %v249_v8 = vld [vmem:[#allocation5] sm:$0xff]   ;;  %s181_s25 = sshll.u32 %s323_s24, 4  ;;  %s182_s25 = int_to_ptr.vmem [resolvable:$true] %s181_s25 }
  0x1f   :  { %215 = vmatprep.subr.bf16.mxu0 %v321_v0  ;;  %v250_v9 = vld [vmem:[#allocation2] sm:$0xff]   ;;  %s291_s26 = scalar_lea.vmem %s182_s25, 256  ;;  %p296_p11 = scmp.lt.s32.totalorder %s182_s25, %s182_s25 }
  0x20   :  { %v194_v10 = vld [vmem:[%s360_s2] ss:$0 sm:$0xff]  ;;  %p292_p10 = scmp.ne.s32.totalorder %s182_s25, %s291_s26  ;;  %p297_p12 = scmp.lt.s32.totalorder %s291_s26, %s291_s26 }
  0x22   :  { %216 = vmatpush3.bf16.msra.mxu0 %v243_v2  ;;  %p298_p13 = por %p297_p12, %p296_p11 }
  0x23   :  { %217 = vmatprep.subr.bf16.mxu0 %v321_v0 }
  0x24   :  { %p299_p0 = pnand %p298_p13, %p292_p10 }
  0x26   :  { %218 = vmatpush3.bf16.msra.mxu0 %v244_v3 }
  0x27   :  { %219 = vmatprep.subr.bf16.mxu0 %v321_v0 }
  0x2a   :  { %220 = vmatpush3.bf16.msra.mxu0 %v245_v4 }
  0x2b   :  { %221 = vmatprep.subr.bf16.mxu0 %v321_v0 }
  0x2e   :  { %222 = vmatpush3.bf16.msra.mxu0 %v246_v5 }
  0x2f   :  { %223 = vmatprep.subr.bf16.mxu0 %v321_v0 }
  0x32   :  { %224 = vmatpush3.bf16.msra.mxu0 %v247_v6 }
  0x33   :  { %225 = vmatprep.subr.bf16.mxu0 %v321_v0 }
  0x36   :  { %226 = vmatpush3.bf16.msra.mxu0 %v248_v7 }
  0x37   :  { %227 = vmatprep.subr.bf16.mxu0 %v321_v0 }
  0x3a   :  { %228 = vmatpush3.bf16.msra.mxu0 %v249_v8 }
  0x3d   :  { %230 = vmatmul.mubr.bf16.vlgmr.msra.gmra.mxu0 %v250_v9 }
  0xfd   :  { %v165_v11 = vpop.f32.mrf.mxu0 }
  0xfe   :  { %v172_v12 = vadd.f32 %v194_v10, %v165_v11 }
  0xff   :  { %v231_v13 = vpop.f32.mrf.mxu0 }
 0x100   :  { %174 = vst [vmem:[#allocation7] sm:$0xff] %v172_v12 }
 0x101   :  { %v168_v14 = vpop.f32.mrf.mxu0 }
 0x102   :  { %v173_v15 = vadd.f32 %v194_v10, %v168_v14 }
 0x103   :  { %v232_v16 = vpop.f32.mrf.mxu0 }
 0x104   :  { %175 = vst [vmem:[#allocation7 + $0x8] sm:$0xff] %v173_v15 }
 0x105   :  { %302 = shalt.err (!%p299_p0)
}
 0x106   :  { %s324_s27 = smov 128   ;;  %s325_s2 = smov 8  }
 0x107   :  { %187 = dma.vmem_to_hbm [thread:$0]  %s182_s25, 256, %s361_s3, [#allocation4], %s324_s27, %s324_s27, %s325_s2  }
 0x108   :  { %315 = dma.done.wait [#allocation4], 256  }
 0x109   :  { %316 = vsyncadd [#allocation4], 4294967040 }
 0x10a   :  { %191 = vsyncpa [#allocation3], 1 }
 0x10b   :  { %192 = vsyncpa [#allocation6], 1 }
 0x10c   :  { %193 = vsyncpa [#allocation4], 1 }

</bundles_post_ra>
